<compile_context>
chip_gen: v6e
topology: v6e:2x2x1
jax: 0.10.0
libtpu: 0.0.40
codegen_flags: <defaults>
</compile_context>

<pallas_src>
import jax
import jax.numpy as jnp
import numpy as np
from jax.experimental import pallas as pl
from jax.experimental.pallas import tpu as pltpu


def _ceil_to(v, m):
    return ((v + m - 1) // m) * m


def cls_head_kernel(x_ref, w_ref, b_ref, o_ref, acc_ref):
    """Fused avg-pool + linear classifier, one (batch-tile, channel-tile) step.

    x_ref:   (TN, TC, S)   bf16 features, S = temporal*H*W
    w_ref:   (TC, K_pad)   bf16 fc weight, transposed, pre-scaled by 1/S
    b_ref:   (1, K_pad)    f32 bias (zero-padded along K)
    o_ref:   (TN, K_pad)   f32 class scores (lane-dense, padded)
    acc_ref: (TN, K_pad)   f32 accumulator across the channel grid axis
    """
    c_idx = pl.program_id(1)

    @pl.when(c_idx == 0)
    def _():
        acc_ref[...] = jnp.zeros_like(acc_ref)

    # Pooling: sum over S in f32 (the 1/S scale is already folded into w_ref).
    pooled = jnp.sum(x_ref[...].astype(jnp.float32), axis=2)          # (TN, TC)

    # Classifier: bf16 MXU matmul, f32 accumulate.
    acc_ref[...] += jnp.dot(pooled.astype(w_ref.dtype), w_ref[...],
                            preferred_element_type=jnp.float32)

    @pl.when(c_idx == pl.num_programs(1) - 1)
    def _():
        o_ref[...] = (acc_ref[...] + b_ref[...]).astype(o_ref.dtype)


def prepare_cls_head_params(weight, bias, pool_size, *, compute_dtype=jnp.bfloat16):
    """One-time (model-load) prep of fc_cls_out parameters.

    weight: (K, C) nn.Linear weight;  bias: (K,);  pool_size: S = T*H*W.
    Returns:
      w_t: (C, K_pad) compute_dtype weight, transposed, pre-scaled by 1/S,
           zero-padded so K_pad is a multiple of 128 (lane-dense output store).
      b2d: (1, K_pad) f32 bias, zero-padded.
    """
    k, c = weight.shape
    k_pad = _ceil_to(k, 128)
    w_t = jnp.transpose(weight).astype(jnp.float32) * (1.0 / float(pool_size))
    w_t = jnp.pad(w_t, ((0, 0), (0, k_pad - k))).astype(compute_dtype)
    b2d = jnp.pad(bias.astype(jnp.float32), (0, k_pad - k)).reshape(1, k_pad)
    return w_t, b2d


def cls_head_inference(x, w_t, b2d, num_classes, *, batch_tile=8, channel_tile=None):
    """x: (N, C, H, W) or (N, C, T, H, W); w_t/b2d from prepare_cls_head_params."""
    if x.ndim == 4:
        x = x[:, :, None, :, :]                       # unsqueeze(2)
    n, c, t, h, w = x.shape
    s = t * h * w
    k_pad = w_t.shape[1]

    # In production the backbone already emits bf16; this cast is then a no-op.
    x_flat = x.reshape(n, c, s).astype(w_t.dtype)

    # Pad batch to a sublane multiple; padded rows are zeros and sliced away.
    n_pad = _ceil_to(n, batch_tile)
    if n_pad != n:
        x_flat = jnp.pad(x_flat, ((0, n_pad - n), (0, 0), (0, 0)))

    tc = c if channel_tile is None else channel_tile
    assert c % tc == 0
    grid = (n_pad // batch_tile, c // tc)

    out = pl.pallas_call(
        cls_head_kernel,
        out_shape=jax.ShapeDtypeStruct((n_pad, k_pad), jnp.float32),
        grid_spec=pltpu.PrefetchScalarGridSpec(
            num_scalar_prefetch=0,
            grid=grid,
            in_specs=[
                pl.BlockSpec((batch_tile, tc, s), lambda i, ci: (i, ci, 0)),
                pl.BlockSpec((tc, k_pad), lambda i, ci: (ci, 0)),
                pl.BlockSpec((1, k_pad), lambda i, ci: (0, 0)),
            ],
            out_specs=pl.BlockSpec((batch_tile, k_pad), lambda i, ci: (i, 0)),
            scratch_shapes=[pltpu.VMEM((batch_tile, k_pad), jnp.float32)],
        ),
        compiler_params=pltpu.CompilerParams(
            dimension_semantics=("parallel", "arbitrary"),
        ),
    )(x_flat, w_t, b2d)

    return out[:n, :num_classes]


if __name__ == "__main__":
    # Small shapes consistent with the module (scaled-down ClsHead defaults):
    # batch=2, in_channels=32, spatial_size=8, temporal_size=1, num_classes=16
    N, C, H, W = 2, 32, 8, 8
    NUM_CLASSES = 16
    INIT_STD = 0.01

    key = jax.random.PRNGKey(0)
    kx, kw = jax.random.split(key)
    x = jax.random.normal(kx, (N, C, H, W), dtype=jnp.float32)

    # init_weights(): weight ~ Normal(0, init_std), bias = 0
    weight = INIT_STD * jax.random.normal(kw, (NUM_CLASSES, C), dtype=jnp.float32)
    bias = jnp.zeros((NUM_CLASSES,), dtype=jnp.float32)

    # One-time parameter prep (fold 1/S, transpose, bf16 cast, pad K to 128).
    w_t, b2d = prepare_cls_head_params(weight, bias, pool_size=1 * H * W)

    out = cls_head_inference(x, w_t, b2d, NUM_CLASSES)
    out = jax.block_until_ready(out)

    # Plain-JAX f32 reference of the same forward.
    pooled_ref = jnp.mean(x.reshape(N, C, H * W), axis=2)
    ref = pooled_ref @ weight.T + bias
    assert out.shape == (N, NUM_CLASSES)
    assert np.allclose(np.asarray(out), np.asarray(ref), atol=1e-3, rtol=2e-2), (
        float(np.max(np.abs(np.asarray(out) - np.asarray(ref)))))

    print("KERNEL_OK")
</pallas_src>

<mosaic_0001>
module attributes {stable_mosaic.version = 11 : i64} {
  func.func @cls_head_kernel(%arg0: i32, %arg1: i32, %arg2: memref<8x32x64xbf16, #tpu.memory_space<vmem>>, %arg3: memref<32x128xbf16, #tpu.memory_space<vmem>>, %arg4: memref<1x128xf32, #tpu.memory_space<vmem>>, %arg5: memref<8x128xf32, #tpu.memory_space<vmem>>, %arg6: memref<8x128xf32, #tpu.memory_space<vmem>>) attributes {dimension_semantics = [#tpu.dimension_semantics<parallel>, #tpu.dimension_semantics<arbitrary>], iteration_bounds = array<i64: 1, 1>, scalar_prefetch = 0 : i64, scratch_operands = 1 : i64, tpu.core_type = #tpu.core_type<tc>, window_params = [{transform_indices = @transform_0, window_bounds = array<i64: 8, 32, 64>}, {transform_indices = @transform_1, window_bounds = array<i64: 32, 128>}, {pipeline_mode = #tpu.pipeline_mode<synchronous>, transform_indices = @transform_2, window_bounds = array<i64: 1, 128>}, {transform_indices = @transform_3, window_bounds = array<i64: 8, 128>}]} {
    %c0_i32 = arith.constant 0 : i32
    %0 = arith.cmpi eq, %arg1, %c0_i32 : i32
    %1 = arith.extui %0 : i1 to i32
    %c0_i32_0 = arith.constant 0 : i32
    %2 = arith.cmpi ne, %1, %c0_i32_0 : i32
    scf.if %2 {
      %cst_12 = arith.constant 0.000000e+00 : f32
      %15 = vector.broadcast %cst_12 : f32 to vector<8x128xf32>
      %c0_13 = arith.constant 0 : index
      %c0_14 = arith.constant 0 : index
      %16 = vector.load %arg6[%c0_13, %c0_14] : memref<8x128xf32, #tpu.memory_space<vmem>>, vector<8x128xf32>
      tpu.vector_store %arg6[%c0_13, %c0_14], %15 {strides = array<i32>} : memref<8x128xf32, #tpu.memory_space<vmem>>, vector<8x128xf32>,
    } else {
    }
    %c0 = arith.constant 0 : index
    %c0_1 = arith.constant 0 : index
    %c0_2 = arith.constant 0 : index
    %3 = vector.load %arg2[%c0, %c0_1, %c0_2] : memref<8x32x64xbf16, #tpu.memory_space<vmem>>, vector<8x32x64xbf16>
    %4 = arith.extf %3 : vector<8x32x64xbf16> to vector<8x32x64xf32>
    %cst = arith.constant dense<0.000000e+00> : vector<8x32xf32>
    %5 = vector.multi_reduction <add>, %4, %cst [2] : vector<8x32x64xf32> to vector<8x32xf32>
    %c0_3 = arith.constant 0 : index
    %c0_4 = arith.constant 0 : index
    %6 = vector.load %arg6[%c0_3, %c0_4] : memref<8x128xf32, #tpu.memory_space<vmem>>, vector<8x128xf32>
    %7 = arith.truncf %5 : vector<8x32xf32> to vector<8x32xbf16>
    %c0_5 = arith.constant 0 : index
    %c0_6 = arith.constant 0 : index
    %8 = vector.load %arg3[%c0_5, %c0_6] : memref<32x128xbf16, #tpu.memory_space<vmem>>, vector<32x128xbf16>
    %cst_7 = arith.constant dense<0.000000e+00> : vector<8x128xf32>
    %9 = tpu.matmul %7, %8, %cst_7 {dimension_numbers = #tpu.dot_dimension_numbers<[1], [0], [0], [1], [0, 0, 1, 1], [], []>} : vector<8x32xbf16>, vector<32x128xbf16>, vector<8x128xf32> -> vector<8x128xf32>
    %10 = arith.addf %6, %9 : vector<8x128xf32>
    %c0_8 = arith.constant 0 : index
    %c0_9 = arith.constant 0 : index
    %11 = vector.load %arg6[%c0_8, %c0_9] : memref<8x128xf32, #tpu.memory_space<vmem>>, vector<8x128xf32>
    tpu.vector_store %arg6[%c0_8, %c0_9], %10 {strides = array<i32>} : memref<8x128xf32, #tpu.memory_space<vmem>>, vector<8x128xf32>,
    %c0_i32_10 = arith.constant 0 : i32
    %12 = arith.cmpi eq, %arg1, %c0_i32_10 : i32
    %13 = arith.extui %12 : i1 to i32
    %c0_i32_11 = arith.constant 0 : i32
    %14 = arith.cmpi ne, %13, %c0_i32_11 : i32
    scf.if %14 {
      %c0_12 = arith.constant 0 : index
      %c0_13 = arith.constant 0 : index
      %15 = vector.load %arg6[%c0_12, %c0_13] : memref<8x128xf32, #tpu.memory_space<vmem>>, vector<8x128xf32>
      %c0_14 = arith.constant 0 : index
      %c0_15 = arith.constant 0 : index
      %16 = vector.load %arg4[%c0_14, %c0_15] : memref<1x128xf32, #tpu.memory_space<vmem>>, vector<1x128xf32>
      %17 = vector.broadcast %16 : vector<1x128xf32> to vector<8x128xf32>
      %18 = arith.addf %15, %17 : vector<8x128xf32>
      %c0_16 = arith.constant 0 : index
      %c0_17 = arith.constant 0 : index
      %19 = vector.load %arg5[%c0_16, %c0_17] : memref<8x128xf32, #tpu.memory_space<vmem>>, vector<8x128xf32>
      tpu.vector_store %arg5[%c0_16, %c0_17], %18 {strides = array<i32>} : memref<8x128xf32, #tpu.memory_space<vmem>>, vector<8x128xf32>,
    } else {
    }
    return
  }
  func.func @transform_0(%arg0: i32, %arg1: i32) -> (i32, i32, i32) {
    %c0_i32 = arith.constant 0 : i32
    %c0_i32_0 = arith.constant 0 : i32
    return %arg0, %arg1, %c0_i32 : i32, i32, i32
  }
  func.func @transform_1(%arg0: i32, %arg1: i32) -> (i32, i32) {
    %c0_i32 = arith.constant 0 : i32
    %c0_i32_0 = arith.constant 0 : i32
    return %arg1, %c0_i32 : i32, i32
  }
  func.func @transform_2(%arg0: i32, %arg1: i32) -> (i32, i32) {
    %c0_i32 = arith.constant 0 : i32
    %c0_i32_0 = arith.constant 0 : i32
    %c0_i32_1 = arith.constant 0 : i32
    return %c0_i32, %c0_i32_0 : i32, i32
  }
  func.func @transform_3(%arg0: i32, %arg1: i32) -> (i32, i32) {
    %c0_i32 = arith.constant 0 : i32
    %c0_i32_0 = arith.constant 0 : i32
    return %arg0, %c0_i32 : i32, i32
  }
}

</mosaic_0001>

<bundles_post_ra>
// kernel: tpu_custom_call.1
= control target key start
LH: loop header
LB: loop body
LE: loop exit
PB: predicated region body
PF: predicated region fallthrough
CT: control target
= control target key end

     0   :  { %8 = vsyncpa [#allocation4], 0  ;;  %s852_s0 = inlined_call_operand.hbm [shape: bf16[8,32,64], index: 0, kind: input, shape index: {}]   ;;  %s853_s1 = inlined_call_operand.hbm [shape: bf16[32,128], index: 1, kind: input, shape index: {}]   ;;  %s854_s2 = inlined_call_operand.vmem [shape: f32[1,128], index: 2, kind: input, shape index: {}]   ;;  %s855_s3 = inlined_call_operand.hbm [shape: f32[8,128], index: 3, kind: output, shape index: {}]  }
   0x1   :  { %9 = vsyncpa [#allocation7], 0 }
   0x2   :  { %10 = vsyncpa [#allocation5], 0  ;;  %s710_s12 = smov [#allocation3]  }
   0x3   :  { %s16_s13 = sshll.u32 %s710_s12, 4  ;;  %s17_s13 = int_to_ptr.vmem [resolvable:$true] %s16_s13 }
   0x4   :  { %s652_s14 = scalar_lea.vmem %s17_s13, 2048  ;;  %p657_p1 = scmp.lt.s32.totalorder %s17_s13, %s17_s13 }
   0x5   :  { %p653_p0 = scmp.ne.s32.totalorder %s17_s13, %s652_s14  ;;  %p658_p2 = scmp.lt.s32.totalorder %s652_s14, %s652_s14 }
   0x7   :  { %p659_p3 = por %p658_p2, %p657_p1 }
   0x9   :  { %p660_p4 = pnand %p659_p3, %p653_p0 }
   0xb   :  { %663 = shalt.err (!%p660_p4)
}
   0xc   :  { %s711_s15 = smov 64   ;;  %s712_s16 = smov 4  }
   0xd   :  { %22 = dma.hbm_to_vmem [thread:$0]  %s852_s0, 2048, %s17_s13, [#allocation4], %s711_s15, %s711_s15, %s712_s16  }
   0xe   :  { %s713_s19 = smov [#allocation6]  }
   0xf   :  { %s28_s20 = sshll.u32 %s713_s19, 4  ;;  %s29_s20 = int_to_ptr.vmem [resolvable:$true] %s28_s20 }
  0x10   :  { %s672_s21 = scalar_lea.vmem %s29_s20, 256  ;;  %p677_p6 = scmp.lt.s32.totalorder %s29_s20, %s29_s20 }
  0x11   :  { %p673_p5 = scmp.ne.s32.totalorder %s29_s20, %s672_s21  ;;  %p678_p7 = scmp.lt.s32.totalorder %s672_s21, %s672_s21 }
  0x13   :  { %p679_p8 = por %p678_p7, %p677_p6 }
  0x15   :  { %p680_p9 = pnand %p679_p8, %p673_p5 }
  0x17   :  { %683 = shalt.err (!%p680_p9)
}
  0x18   :  { %34 = dma.hbm_to_vmem [thread:$0]  %s853_s1, 256, %s29_s20, [#allocation7], %s711_s15, %s711_s15, %s712_s16  }
  0x19   :  { %704 = dma.done.wait [#allocation4], 2048  }
  0x1a   :  { %705 = vsyncadd [#allocation4], 4294965248 }
  0x1b   :  { %706 = dma.done.wait [#allocation7], 256  }
  0x1c   :  { %707 = vsyncadd [#allocation7], 4294967040  ;;  %v610_v0 = vld [vmem:[#allocation3 + $0x10] sm:$0xff]   ;;  %vm113_vm0 = vcmask 523264   ;;  %v546_v1 = vld [vmem:[#allocation3] sm:$0xff]   ;;  %vm715_vm1 = vmmov 0  }
  0x1d   :  { %v555_v2 = vunpack.c.l.bf16 %v610_v0  ;;  %v547_v3 = vunpack.c.l.bf16 %v546_v1  ;;  %v556_v4 = vunpack.c.h.bf16 %v610_v0  ;;  %v548_v5 = vunpack.c.h.bf16 %v546_v1  ;;  %v609_v6 = vld [vmem:[#allocation3 + $0x8] sm:$0xff]   ;;  %v611_v13 = vld [vmem:[#allocation3 + $0x18] sm:$0xff]   ;;  %v612_v18 = vld [vmem:[#allocation3 + $0x20] sm:$0xff]   ;;  %s716_s24 = smov [#allocation8]  }
  0x1e   :  { %v552_v11 = vunpack.c.h.bf16 %v609_v6  ;;  %v551_v12 = vunpack.c.l.bf16 %v609_v6  ;;  %v560_v16 = vunpack.c.h.bf16 %v611_v13  ;;  %v559_v17 = vunpack.c.l.bf16 %v611_v13  ;;  %v613_v23 = vld [vmem:[#allocation3 + $0x28] sm:$0xff]   ;;  %v614_v28 = vld [vmem:[#allocation3 + $0x30] sm:$0xff]   ;;  %v615_v33 = vld [vmem:[#allocation3 + $0x38] sm:$0xff]   ;;  %s531_s25 = sshll.u32 %s716_s24, 4  ;;  %s532_s25 = int_to_ptr.vmem [resolvable:$true] %s531_s25 }
  0x1f   :  { %v126_v7 = vsel %vm113_vm0, %v555_v2, 0.0  ;;  %v114_v8 = vsel %vm113_vm0, %v547_v3, 0.0  ;;  %v129_v9 = vsel %vm113_vm0, %v556_v4, 0.0  ;;  %v117_v10 = vsel %vm113_vm0, %v548_v5, 0.0  ;;  %v616_v38 = vld [vmem:[#allocation3 + $0x40] sm:$0xff]   ;;  %v617_v43 = vld [vmem:[#allocation3 + $0x48] sm:$0xff]   ;;  %p689_p11 = scmp.lt.s32.totalorder %s532_s25, %s532_s25 }
  0x20   :  { %127 = vadd.xlane.f32.xlu1 %v126_v7  ;;  %115 = vadd.xlane.f32.xlu0 %v114_v8  ;;  %v123_v14 = vsel %vm113_vm0, %v552_v11, 0.0  ;;  %v120_v15 = vsel %vm113_vm0, %v551_v12, 0.0  ;;  %v135_v19 = vsel %vm113_vm0, %v560_v16, 0.0  ;;  %v132_v20 = vsel %vm113_vm0, %v559_v17, 0.0  ;;  %v618_v48 = vld [vmem:[#allocation3 + $0x50] sm:$0xff]   ;;  %v619_v53 = vld [vmem:[#allocation3 + $0x58] sm:$0xff]  }
  0x21   :  { %v564_v21 = vunpack.c.h.bf16 %v612_v18  ;;  %v563_v22 = vunpack.c.l.bf16 %v612_v18  ;;  %v568_v26 = vunpack.c.h.bf16 %v613_v23  ;;  %v567_v27 = vunpack.c.l.bf16 %v613_v23  ;;  %v620_v58 = vld [vmem:[#allocation3 + $0x60] sm:$0xff]   ;;  %v621_v63 = vld [vmem:[#allocation3 + $0x68] sm:$0xff]   ;;  %v622_v4 = vld [vmem:[#allocation3 + $0x70] sm:$0xff]   ;;  %s684_s26 = scalar_lea.vmem %s532_s25, 128 }
  0x22   :  { %v572_v31 = vunpack.c.h.bf16 %v614_v28  ;;  %v571_v32 = vunpack.c.l.bf16 %v614_v28  ;;  %v576_v36 = vunpack.c.h.bf16 %v615_v33  ;;  %v575_v37 = vunpack.c.l.bf16 %v615_v33  ;;  %v642_v16 = vld [vmem:[#allocation6 + $0x8] sm:$0xff]   ;;  %v643_v18 = vld [vmem:[#allocation6] sm:$0xff]   ;;  %p685_p10 = scmp.ne.s32.totalorder %s532_s25, %s684_s26  ;;  %p690_p12 = scmp.lt.s32.totalorder %s684_s26, %s684_s26 }
  0x23   :  { %v141_v24 = vsel %vm113_vm0, %v564_v21, 0.0  ;;  %v138_v25 = vsel %vm113_vm0, %v563_v22, 0.0  ;;  %v147_v29 = vsel %vm113_vm0, %v568_v26, 0.0  ;;  %v144_v30 = vsel %vm113_vm0, %v567_v27, 0.0 }
  0x24   :  { %130 = vadd.xlane.f32.xlu1 %v129_v9  ;;  %118 = vadd.xlane.f32.xlu0 %v117_v10  ;;  %v153_v34 = vsel %vm113_vm0, %v572_v31, 0.0  ;;  %v150_v35 = vsel %vm113_vm0, %v571_v32, 0.0  ;;  %v159_v39 = vsel %vm113_vm0, %v576_v36, 0.0  ;;  %v156_v40 = vsel %vm113_vm0, %v575_v37, 0.0  ;;  %v623_v9 = vld [vmem:[#allocation3 + $0x78] sm:$0xff]   ;;  %p691_p13 = por %p690_p12, %p689_p11 }
  0x25   :  { %v580_v41 = vunpack.c.h.bf16 %v616_v38  ;;  %v579_v42 = vunpack.c.l.bf16 %v616_v38  ;;  %v584_v46 = vunpack.c.h.bf16 %v617_v43  ;;  %v583_v47 = vunpack.c.l.bf16 %v617_v43 }
  0x26   :  { %v588_v51 = vunpack.c.h.bf16 %v618_v48  ;;  %v587_v52 = vunpack.c.l.bf16 %v618_v48  ;;  %v592_v56 = vunpack.c.h.bf16 %v619_v53  ;;  %v591_v57 = vunpack.c.l.bf16 %v619_v53  ;;  %p692_p0 = pnand %p691_p13, %p685_p10 }
  0x27   :  { %v165_v44 = vsel %vm113_vm0, %v580_v41, 0.0  ;;  %v162_v45 = vsel %vm113_vm0, %v579_v42, 0.0  ;;  %v171_v49 = vsel %vm113_vm0, %v584_v46, 0.0  ;;  %v168_v50 = vsel %vm113_vm0, %v583_v47, 0.0 }
  0x28   :  { %124 = vadd.xlane.f32.xlu1 %v123_v14  ;;  %121 = vadd.xlane.f32.xlu0 %v120_v15  ;;  %v177_v54 = vsel %vm113_vm0, %v588_v51, 0.0  ;;  %v174_v55 = vsel %vm113_vm0, %v587_v52, 0.0  ;;  %v183_v59 = vsel %vm113_vm0, %v592_v56, 0.0  ;;  %v180_v60 = vsel %vm113_vm0, %v591_v57, 0.0 }
  0x29   :  { %v596_v61 = vunpack.c.h.bf16 %v620_v58  ;;  %v595_v62 = vunpack.c.l.bf16 %v620_v58  ;;  %v600_v2 = vunpack.c.h.bf16 %v621_v63  ;;  %v599_v3 = vunpack.c.l.bf16 %v621_v63 }
  0x2a   :  { %v604_v7 = vunpack.c.h.bf16 %v622_v4  ;;  %v603_v8 = vunpack.c.l.bf16 %v622_v4  ;;  %v608_v12 = vunpack.c.h.bf16 %v623_v9  ;;  %v607_v13 = vunpack.c.l.bf16 %v623_v9 }
  0x2b   :  { %v189_v0 = vsel %vm113_vm0, %v596_v61, 0.0  ;;  %v186_v1 = vsel %vm113_vm0, %v595_v62, 0.0  ;;  %v195_v5 = vsel %vm113_vm0, %v600_v2, 0.0  ;;  %v192_v6 = vsel %vm113_vm0, %v599_v3, 0.0 }
  0x2c   :  { %136 = vadd.xlane.f32.xlu1 %v135_v19  ;;  %133 = vadd.xlane.f32.xlu0 %v132_v20  ;;  %v201_v10 = vsel %vm113_vm0, %v604_v7, 0.0  ;;  %v198_v11 = vsel %vm113_vm0, %v603_v8, 0.0  ;;  %v207_v14 = vsel %vm113_vm0, %v608_v12, 0.0  ;;  %v204_v15 = vsel %vm113_vm0, %v607_v13, 0.0 }
  0x2d   :  { %v714_v17 = vmov 0.0   ;;  %v279_v31 = vlaneseq  ;;  %vm290_vm2 = vcmask 130112   ;;  %vm297_vm3 = vcmask 195712  }
  0x2e   :  { %627 = vmatprep.subr.bf16.mxu0 %v714_v17  ;;  %631 = vmatprep.mubr.msk.bf16.mxu0 %vm715_vm1, %v714_v17  ;;  %vm304_vm4 = vcmask 261312   ;;  %vm439_vm5 = vcmask 1041409   ;;  %vm441_vm6 = vcmask 1042434   ;;  %vm443_vm7 = vcmask 1043459  }
  0x2f   :  { %628 = vmatpush3.bf16.msra.mxu0 %v642_v16  ;;  %v282_v37 = vshrl.u32 %v279_v31, 7  ;;  %vm445_vm8 = vcmask 1044484   ;;  %vm447_vm9 = vcmask 1045509   ;;  %vm449_vm10 = vcmask 1046534  }
  0x30   :  { %142 = vadd.xlane.f32.xlu1 %v141_v24  ;;  %139 = vadd.xlane.f32.xlu0 %v138_v25  ;;  %vm451_vm11 = vcmask 1047559   ;;  %vm466_vm12 = vcmask 261120  }
  0x31   :  { %629 = vmatprep.subr.bf16.mxu0 %v714_v17 }
  0x33   :  { %630 = vmatpush3.bf16.msra.mxu0 %v643_v18 }
  0x34   :  { %148 = vadd.xlane.f32.xlu1 %v147_v29  ;;  %145 = vadd.xlane.f32.xlu0 %v144_v30 }
  0x38   :  { %154 = vadd.xlane.f32.xlu1 %v153_v34  ;;  %151 = vadd.xlane.f32.xlu0 %v150_v35  ;;  %v280_v34 = vand.u32 127, %v279_v31 }
  0x3a   :  { %v285_v38 = vadd.s32 4294967288, %v280_v34  ;;  %v292_v42 = vadd.s32 4294967280, %v280_v34  ;;  %v299_v52 = vadd.s32 4294967272, %v280_v34 }
  0x3c   :  { %160 = vadd.xlane.f32.xlu1 %v159_v39  ;;  %157 = vadd.xlane.f32.xlu0 %v156_v40  ;;  %v779_v51 = vsub.s32 %v292_v42, %v282_v37  ;;  %v783_v62 = vsub.s32 %v299_v52, %v282_v37 }
  0x40   :  { %166 = vadd.xlane.f32.xlu1 %v165_v44  ;;  %163 = vadd.xlane.f32.xlu0 %v162_v45  ;;  %v775_v44 = vsub.s32 %v280_v34, %v282_v37  ;;  %v777_v45 = vsub.s32 %v285_v38, %v282_v37 }
  0x44   :  { %172 = vadd.xlane.f32.xlu1 %v171_v49  ;;  %169 = vadd.xlane.f32.xlu0 %v168_v50 }
  0x48   :  { %178 = vadd.xlane.f32.xlu1 %v177_v54  ;;  %175 = vadd.xlane.f32.xlu0 %v174_v55 }
  0x4c   :  { %184 = vadd.xlane.f32.xlu1 %v183_v59  ;;  %181 = vadd.xlane.f32.xlu0 %v180_v60 }
  0x50   :  { %190 = vadd.xlane.f32.xlu1 %v189_v0  ;;  %187 = vadd.xlane.f32.xlu0 %v186_v1 }
  0x54   :  { %196 = vadd.xlane.f32.xlu1 %v195_v5  ;;  %193 = vadd.xlane.f32.xlu0 %v192_v6 }
  0x58   :  { %202 = vadd.xlane.f32.xlu1 %v201_v10  ;;  %199 = vadd.xlane.f32.xlu0 %v198_v11 }
  0x5c   :  { %208 = vadd.xlane.f32.xlu1 %v207_v14  ;;  %205 = vadd.xlane.f32.xlu0 %v204_v15 }
  0xa9   :  { %v128_v19 = vpop.xlane.xlu1 %127  ;;  %v116_v20 = vpop.xlane.xlu0 %115 }
  0xad   :  { %v131_v21 = vpop.xlane.xlu1 %130  ;;  %v119_v22 = vpop.xlane.xlu0 %118 }
  0xae   :  { %v211_v39 = vpack.c.bf16 %v119_v22, %v116_v20  ;;  %v213_v46 = vpack.c.bf16 %v131_v21, %v128_v19 }
  0xb0   :  { %v247_v47 = vunpack.c.l.b16 %v211_v39  ;;  %v248_v48 = vunpack.c.h.b16 %v211_v39  ;;  %v251_v56 = vunpack.c.l.b16 %v213_v46  ;;  %v252_v57 = vunpack.c.h.b16 %v213_v46 }
  0xb1   :  { %v125_v23 = vpop.xlane.xlu1 %124  ;;  %v122_v24 = vpop.xlane.xlu0 %121 }
  0xb2   :  { %v212_v43 = vpack.c.bf16 %v125_v23, %v122_v24  ;;  %v284_v58 = vrot.slane %v247_v47, %v775_v44  ;;  %v289_v59 = vrot.slane %v248_v48, %v777_v45  ;;  %v309_v6 = vrot.slane %v251_v56, %v775_v44 }
  0xb3   :  { %v313_v7 = vrot.slane %v252_v57, %v777_v45 }
  0xb4   :  { %v249_v53 = vunpack.c.l.b16 %v212_v43  ;;  %v250_v63 = vunpack.c.h.b16 %v212_v43  ;;  %v291_v8 = vsel %vm290_vm2, %v289_v59, %v284_v58 }
  0xb5   :  { %v137_v25 = vpop.xlane.xlu1 %136  ;;  %v134_v26 = vpop.xlane.xlu0 %133  ;;  %v314_v23 = vsel %vm290_vm2, %v313_v7, %v309_v6 }
  0xb6   :  { %v214_v54 = vpack.c.bf16 %v137_v25, %v134_v26  ;;  %v296_v0 = vrot.slane %v249_v53, %v779_v51  ;;  %v303_v12 = vrot.slane %v250_v63, %v783_v62 }
  0xb8   :  { %v253_v3 = vunpack.c.l.b16 %v214_v54  ;;  %v298_v11 = vsel %vm297_vm3, %v296_v0, %v291_v8  ;;  %v254_v13 = vunpack.c.h.b16 %v214_v54 }
  0xb9   :  { %v143_v27 = vpop.xlane.xlu1 %142  ;;  %v140_v28 = vpop.xlane.xlu0 %139 }
  0xba   :  { %v215_v55 = vpack.c.bf16 %v143_v27, %v140_v28  ;;  %v318_v19 = vrot.slane %v253_v3, %v779_v51 }
  0xbc   :  { %v255_v4 = vunpack.c.l.b16 %v215_v55  ;;  %v256_v5 = vunpack.c.h.b16 %v215_v55  ;;  %v319_v37 = vsel %vm297_vm3, %v318_v19, %v314_v23 }
  0xbd   :  { %v149_v29 = vpop.xlane.xlu1 %148  ;;  %v146_v30 = vpop.xlane.xlu0 %145 }
  0xbe   :  { %v216_v1 = vpack.c.bf16 %v149_v29, %v146_v30  ;;  %v328_v20 = vrot.slane %v255_v4, %v775_v44  ;;  %v332_v21 = vrot.slane %v256_v5, %v777_v45  ;;  %v796_v29 = vsel %vm304_vm4, %v303_v12, %v298_v11 }
  0xbf   :  { %v323_v30 = vrot.slane %v254_v13, %v783_v62 }
  0xc0   :  { %v257_v14 = vunpack.c.l.b16 %v216_v1  ;;  %v258_v24 = vunpack.c.h.b16 %v216_v1  ;;  %v333_v38 = vsel %vm290_vm2, %v332_v21, %v328_v20 }
  0xc1   :  { %v155_v32 = vpop.xlane.xlu1 %154  ;;  %v152_v33 = vpop.xlane.xlu0 %151 }
  0xc2   :  { %v217_v2 = vpack.c.bf16 %v155_v32, %v152_v33  ;;  %v337_v31 = vrot.slane %v257_v14, %v779_v51 }
  0xc4   :  { %v259_v15 = vunpack.c.l.b16 %v217_v2  ;;  %v260_v16 = vunpack.c.h.b16 %v217_v2 }
  0xc5   :  { %v161_v35 = vpop.xlane.xlu1 %160  ;;  %v158_v36 = vpop.xlane.xlu0 %157 }
  0xc6   :  { %v218_v17 = vpack.c.bf16 %v161_v35, %v158_v36  ;;  %v347_v33 = vrot.slane %v259_v15, %v775_v44  ;;  %v351_v34 = vrot.slane %v260_v16, %v777_v45 }
  0xc8   :  { %v261_v35 = vunpack.c.l.b16 %v218_v17  ;;  %v352_v54 = vsel %vm290_vm2, %v351_v34, %v347_v33  ;;  %v262_v55 = vunpack.c.h.b16 %v218_v17 }
  0xc9   :  { %v167_v40 = vpop.xlane.xlu1 %166  ;;  %v164_v41 = vpop.xlane.xlu0 %163 }
  0xca   :  { %v219_v18 = vpack.c.bf16 %v167_v40, %v164_v41  ;;  %v342_v41 = vrot.slane %v258_v24, %v783_v62  ;;  %v356_v56 = vrot.slane %v261_v35, %v779_v51  ;;  %v361_v11 = vrot.slane %v262_v55, %v783_v62 }
  0xcc   :  { %v263_v36 = vunpack.c.l.b16 %v219_v18  ;;  %v264_v39 = vunpack.c.h.b16 %v219_v18 }
  0xcd   :  { %v173_v49 = vpop.xlane.xlu1 %172  ;;  %v170_v50 = vpop.xlane.xlu0 %169 }
  0xce   :  { %v220_v22 = vpack.c.bf16 %v173_v49, %v170_v50  ;;  %v338_v49 = vsel %vm297_vm3, %v337_v31, %v333_v38  ;;  %v366_v57 = vrot.slane %v263_v36, %v775_v44  ;;  %v370_v58 = vrot.slane %v264_v39, %v777_v45 }
  0xcf   :  { %v343_v17 = vsel %vm304_vm4, %v342_v41, %v338_v49 }
  0xd0   :  { %v265_v40 = vunpack.c.l.b16 %v220_v22  ;;  %v266_v59 = vunpack.c.h.b16 %v220_v22  ;;  %v371_v13 = vsel %vm290_vm2, %v370_v58, %v366_v57 }
  0xd1   :  { %v179_v60 = vpop.xlane.xlu1 %178  ;;  %v176_v61 = vpop.xlane.xlu0 %175 }
  0xd2   :  { %v221_v25 = vpack.c.bf16 %v179_v60, %v176_v61  ;;  %v375_v60 = vrot.slane %v265_v40, %v779_v51  ;;  %v380_v14 = vrot.slane %v266_v59, %v783_v62 }
  0xd4   :  { %v267_v42 = vunpack.c.l.b16 %v221_v25  ;;  %v268_v43 = vunpack.c.h.b16 %v221_v25  ;;  %v376_v18 = vsel %vm297_vm3, %v375_v60, %v371_v13 }
  0xd5   :  { %v185_v9 = vpop.xlane.xlu1 %184  ;;  %v182_v10 = vpop.xlane.xlu0 %181  ;;  %v381_v33 = vsel %vm304_vm4, %v380_v14, %v376_v18 }
  0xd6   :  { %v222_v26 = vpack.c.bf16 %v185_v9, %v182_v10  ;;  %v385_v63 = vrot.slane %v267_v42, %v775_v44  ;;  %v389_v0 = vrot.slane %v268_v43, %v777_v45  ;;  %v324_v9 = vsel %vm304_vm4, %v323_v30, %v319_v37 }
  0xd7   :  { %v357_v10 = vsel %vm297_vm3, %v356_v56, %v352_v54 }
  0xd8   :  { %v269_v46 = vunpack.c.l.b16 %v222_v26  ;;  %v270_v1 = vunpack.c.h.b16 %v222_v26  ;;  %v390_v19 = vsel %vm290_vm2, %v389_v0, %v385_v63 }
  0xd9   :  { %v191_v27 = vpop.xlane.xlu1 %190  ;;  %v188_v28 = vpop.xlane.xlu0 %187 }
  0xda   :  { %v223_v32 = vpack.c.bf16 %v191_v27, %v188_v28  ;;  %v394_v2 = vrot.slane %v269_v46, %v779_v51  ;;  %v399_v20 = vrot.slane %v270_v1, %v783_v62  ;;  %v362_v27 = vsel %vm304_vm4, %v361_v11, %v357_v10 }
  0xdc   :  { %v271_v50 = vunpack.c.l.b16 %v223_v32  ;;  %v272_v52 = vunpack.c.h.b16 %v223_v32  ;;  %v395_v23 = vsel %vm297_vm3, %v394_v2, %v390_v19  ;;  %v440_v32 = vsel %vm439_vm5, %v324_v9, %v796_v29 }
  0xdd   :  { %v197_v47 = vpop.xlane.xlu1 %196  ;;  %v194_v48 = vpop.xlane.xlu0 %193  ;;  %v442_v36 = vsel %vm441_vm6, %v343_v17, %v440_v32  ;;  %v400_v37 = vsel %vm304_vm4, %v399_v20, %v395_v23 }
  0xde   :  { %v224_v53 = vpack.c.bf16 %v197_v47, %v194_v48  ;;  %v404_v5 = vrot.slane %v271_v50, %v775_v44  ;;  %v408_v6 = vrot.slane %v272_v52, %v777_v45  ;;  %v444_v38 = vsel %vm443_vm7, %v362_v27, %v442_v36 }
  0xdf   :  { %v446_v29 = vsel %vm445_vm8, %v381_v33, %v444_v38 }
  0xe0   :  { %v273_v61 = vunpack.c.l.b16 %v224_v53  ;;  %v274_v7 = vunpack.c.h.b16 %v224_v53  ;;  %v409_v24 = vsel %vm290_vm2, %v408_v6, %v404_v5  ;;  %v448_v41 = vsel %vm447_vm9, %v400_v37, %v446_v29 }
  0xe1   :  { %v203_v3 = vpop.xlane.xlu1 %202  ;;  %v200_v4 = vpop.xlane.xlu0 %199 }
  0xe2   :  { %v225_v8 = vpack.c.bf16 %v203_v3, %v200_v4  ;;  %v413_v12 = vrot.slane %v273_v61, %v779_v51  ;;  %v418_v25 = vrot.slane %v274_v7, %v783_v62 }
  0xe4   :  { %v275_v15 = vunpack.c.l.b16 %v225_v8  ;;  %v276_v16 = vunpack.c.h.b16 %v225_v8  ;;  %v414_v28 = vsel %vm297_vm3, %v413_v12, %v409_v24 }
  0xe5   :  { %v209_v21 = vpop.xlane.xlu1 %208  ;;  %v206_v22 = vpop.xlane.xlu0 %205  ;;  %v419_v39 = vsel %vm304_vm4, %v418_v25, %v414_v28 }
  0xe6   :  { %v226_v26 = vpack.c.bf16 %v209_v21, %v206_v22  ;;  %v423_v30 = vrot.slane %v275_v15, %v775_v44  ;;  %v427_v31 = vrot.slane %v276_v16, %v777_v45  ;;  %v450_v46 = vsel %vm449_vm10, %v419_v39, %v448_v41 }
  0xe8   :  { %v277_v34 = vunpack.c.l.b16 %v226_v26  ;;  %v278_v35 = vunpack.c.h.b16 %v226_v26  ;;  %v428_v40 = vsel %vm290_vm2, %v427_v31, %v423_v30 }
  0xea   :  { %v432_v44 = vrot.slane %v277_v34, %v779_v51  ;;  %v437_v45 = vrot.slane %v278_v35, %v783_v62  ;;  %v544_v51 = vld [vmem:[%s854_s2] ss:$0 sm:$0xff] }
  0xec   :  { %v433_v42 = vsel %vm297_vm3, %v432_v44, %v428_v40 }
  0xed   :  { %v438_v43 = vsel %vm304_vm4, %v437_v45, %v433_v42 }
  0xee   :  { %v452_v47 = vsel %vm451_vm11, %v438_v43, %v450_v46 }
  0xef   :  { %v453_v48 = vpack.c.b16 %v452_v47, %v452_v47 }
  0xf1   :  { %632 = vmatmul.mubr.msk.bf16.vlgmr.msra.gmra.mxu0 %vm466_vm12, %v453_v48 }
 0x1b1   :  { %v504_v62 = vpop.f32.mrf.mxu0 }
 0x1b2   :  { %v523_v49 = vadd.f32 %v544_v51, %v504_v62 }
 0x1b3   :  { %v633_v50 = vpop.f32.mrf.mxu0 }
 0x1b4   :  { %524 = vst [vmem:[#allocation8] sm:$0xff] %v523_v49 }
 0x1b5   :  { %v507_v52 = vpop.f32.mrf.mxu0 }
 0x1b6   :  { %695 = shalt.err (!%p692_p0)
}
 0x1b7   :  { %534 = dma.vmem_to_hbm [thread:$0]  %s532_s25, 128, %s855_s3, [#allocation5]   ;;  %v634_v53 = vpop.f32.mrf.mxu0 }
 0x1b8   :  { %708 = dma.done.wait [#allocation5], 128  }
 0x1b9   :  { %709 = vsyncadd [#allocation5], 4294967168 }
 0x1ba   :  { %538 = vsyncpa [#allocation4], 1 }
 0x1bb   :  { %539 = vsyncpa [#allocation7], 1 }
 0x1bc   :  { %540 = vsyncpa [#allocation5], 1 }

</bundles_post_ra>
